<compile_context>
chip_gen: v6e
topology: v6e:2x2x1
jax: 0.10.0
libtpu: 0.0.40
codegen_flags: <defaults>
</compile_context>

<pallas_src>
import functools

import jax
import jax.numpy as jnp
from jax import lax
from jax.experimental import pallas as pl
from jax.experimental.pallas import tpu as pltpu


def _sigmoid(v):
    # exp runs on the EUP; pl.reciprocal keeps the divide off the hot VALU path.
    return pl.reciprocal(1.0 + jnp.exp(-v), approx=False)


def _cbam_kernel(x_ref, wfc_ref, bfc_ref, wconv_ref, o_ref, *, C):
    """One batch tile.  x_ref: (Bt, C, H*W), lane-dense."""
    x = x_ref[...].astype(jnp.float32)                       # (Bt, C, HW)

    # ---- channel attention: global avg pool -> 1x1 conv (+bias) -> sigmoid ----
    pooled = jnp.mean(x, axis=-1)                            # (Bt, C): one lane reduce
    if C < 128:
        # Tiny CxC matvec: VPU broadcast-multiply + reduce; the MXU never
        # amortizes its push/drain latency at this size (and stays exact f32).
        y = jnp.sum(pooled[:, :, None] * wfc_ref[...][None, :, :], axis=1)
    else:
        y = jnp.dot(pooled, wfc_ref[...], preferred_element_type=jnp.float32)
    ch_att = _sigmoid(y + bfc_ref[...])                      # (Bt, C)
    x_ca = x * ch_att[:, :, None]                            # (Bt, C, HW)

    # ---- spatial attention: channel mean/max -> KxK same-conv -> sigmoid ----
    mean_map = jnp.mean(x_ca, axis=1)                        # (Bt, HW)
    max_map = jnp.max(x_ca, axis=1)                          # (Bt, HW)
    # Single fused MXU matmul against the pre-stacked (2*HW, HW) Toeplitz
    # weight: rows 0..HW-1 act on the mean map, rows HW..2*HW-1 on the max map.
    maps = jnp.concatenate([mean_map, max_map], axis=-1)     # (Bt, 2*HW)
    s = jnp.dot(maps, wconv_ref[...], preferred_element_type=jnp.float32)
    o_ref[...] = (x_ca * _sigmoid(s)[:, None, :]).astype(o_ref.dtype)


def _spatial_conv_matrix(w_sa, H, W):
    """Repack the (2, K, K) SpatialAttention weight into a stacked dense
    (2*H*W, H*W) matrix M so that same-padded conv2d(cat, w) ==
    concat([mean.flat, max.flat], -1) @ M.  Depends only on weights/shape ->
    built once at parameter-load time in practice."""
    n_in, K = w_sa.shape[0], w_sa.shape[-1]
    P = K // 2
    hi = jnp.arange(H)[:, None]    # h_in
    ho = jnp.arange(H)[None, :]    # h_out
    wi = jnp.arange(W)[:, None]    # w_in
    wo = jnp.arange(W)[None, :]    # w_out
    ki = hi - ho + P               # (H_in, H_out) tap row index
    kj = wi - wo + P               # (W_in, W_out) tap col index
    valid = (((ki >= 0) & (ki < K))[:, :, None, None]
             & ((kj >= 0) & (kj < K))[None, None, :, :])      # (H,H,W,W)
    taps = w_sa[:, jnp.clip(ki, 0, K - 1)[:, :, None, None],
                jnp.clip(kj, 0, K - 1)[None, None, :, :]]     # (2,H_in,H_out,W_in,W_out)
    taps = taps * valid.astype(w_sa.dtype)
    # -> (ci, h_in, w_in, h_out, w_out) -> (2, H*W, H*W) -> (2*H*W, H*W)
    return taps.transpose(0, 1, 3, 2, 4).reshape(n_in * H * W, H * W)


def _tpu_vmem_capacity_bytes():
    try:
        return int(getattr(pltpu.get_tpu_info(), "vmem_capacity_bytes", 64 << 20))
    except Exception:
        return 64 << 20      # conservative: fits every generation


def _num_tensorcores():
    try:
        kind = jax.devices()[0].device_kind.lower()
        return 2 if "v7" in kind else 1
    except Exception:
        return 1


def cbam_pallas(x, w_fc, b_fc, w_sa, *, kernel_size=7):
    """x: (B, C, H, W); w_fc: (C, C); b_fc: (C,); w_sa: (2, K, K)."""
    B, C, H, W = x.shape
    HW = H * W
    assert w_sa.shape[-1] == kernel_size

    # Lane-dense view: last dim is H*W (contiguous reshape, free).
    x_flat = x.reshape(B, C, HW)

    # Generation-aware VMEM sizing: ~75% of physical capacity as the Mosaic
    # limit (96 MiB on 128 MiB v5e/v6e, 48 MiB on 64 MiB v7x).
    vmem_cap = _tpu_vmem_capacity_bytes()
    vmem_limit = min(vmem_cap * 3 // 4, 112 << 20)

    # Guard the dense Toeplitz path before it blows VMEM at large H*W.
    toeplitz_bytes = 2 * HW * HW * 4
    if 2 * toeplitz_bytes > vmem_limit // 2:
        # TODO(synk): 49-tap pltpu.roll-and-accumulate spatial conv for large H*W.
        raise NotImplementedError(
            "Dense Toeplitz spatial-conv weight too large for VMEM; "
            "roll-and-accumulate fallback not implemented")

    # One-time weight repacking (done at init in a real model).
    w_conv = _spatial_conv_matrix(w_sa.astype(jnp.float32), H, W)   # (2*HW, HW)
    wfc_t = w_fc.astype(jnp.float32).T                              # (C_in, C_out)
    bias = b_fc.astype(jnp.float32).reshape(1, C)

    # Per-batch-row VMEM footprint: double-buffered in + out blocks (input
    # dtype) plus ~3 full-size f32 intermediates kept live inside the kernel
    # (x, x_ca, and the pre-store temp).
    per_batch = 4 * C * HW * x.dtype.itemsize + 3 * C * HW * 4
    weight_bytes = 2 * (toeplitz_bytes + (C * C + C) * 4)   # double-buffered constants
    budget = max(per_batch, int(vmem_limit * 0.85) - weight_bytes)
    bt = int(max(1, min(B, budget // per_batch)))

    # v7x (2 TCs/chip): keep at least num_tc grid steps so the "parallel"
    # batch axis actually feeds both TensorCores; neutral on v5e/v6e.
    num_tc = _num_tensorcores()
    if num_tc > 1 and B >= num_tc:
        bt = min(bt, max(1, B // num_tc))

    # Largest divisor of B not exceeding the budget-sized tile.
    # TODO(synk): for awkward B, a cdiv grid with a ragged last tile would
    # keep tiles at budget size instead of collapsing to a small divisor.
    while B % bt:
        bt -= 1

    kernel = functools.partial(_cbam_kernel, C=C)
    out = pl.pallas_call(
        kernel,
        out_shape=jax.ShapeDtypeStruct((B, C, HW), x.dtype),
        grid=(B // bt,),
        in_specs=[
            pl.BlockSpec((bt, C, HW), lambda b: (b, 0, 0)),
            pl.BlockSpec((C, C), lambda b: (0, 0)),
            pl.BlockSpec((1, C), lambda b: (0, 0)),
            pl.BlockSpec((2 * HW, HW), lambda b: (0, 0)),
        ],
        out_specs=pl.BlockSpec((bt, C, HW), lambda b: (b, 0, 0)),
        compiler_params=pltpu.CompilerParams(
            dimension_semantics=("parallel",),       # batch tiles are independent
            vmem_limit_bytes=int(vmem_limit),
        ),
    )(x_flat, wfc_t, bias, w_conv)
    return out.reshape(B, C, H, W)


def cbam_ref(x, w_fc, b_fc, w_sa, *, kernel_size=7):
    """Pure-JAX reference mirroring the PyTorch CBAM forward."""
    pooled = jnp.mean(x, axis=(2, 3), keepdims=True)                  # (B,C,1,1)
    y = jnp.einsum('oc,bcij->boij', w_fc, pooled) + b_fc.reshape(1, -1, 1, 1)
    x_ca = x * jax.nn.sigmoid(y)
    mean_map = jnp.mean(x_ca, axis=1, keepdims=True)
    max_map = jnp.max(x_ca, axis=1, keepdims=True)
    cat = jnp.concatenate([mean_map, max_map], axis=1)                # (B,2,H,W)
    P = kernel_size // 2
    s = lax.conv_general_dilated(
        cat, w_sa.reshape(1, 2, kernel_size, kernel_size),
        window_strides=(1, 1), padding=((P, P), (P, P)),
        dimension_numbers=('NCHW', 'OIHW', 'NCHW'),
        precision=lax.Precision.HIGHEST)
    return x_ca * jax.nn.sigmoid(s)


if __name__ == "__main__":
    B, C, H, W = 2, 4, 16, 16
    K = 7

    key = jax.random.PRNGKey(0)
    kx, kwfc, kbfc, kwsa = jax.random.split(key, 4)
    x = jax.random.normal(kx, (B, C, H, W), dtype=jnp.float32)
    # ChannelAttention.fc = Conv2d(C, C, 1, bias=True) -> weight (C, C, 1, 1) ~ (C, C)
    w_fc = jax.random.normal(kwfc, (C, C), dtype=jnp.float32) * 0.2
    b_fc = jax.random.normal(kbfc, (C,), dtype=jnp.float32) * 0.1
    # SpatialAttention.cv1 = Conv2d(2, 1, 7, padding=3, bias=False) -> weight (2, 7, 7)
    w_sa = jax.random.normal(kwsa, (2, K, K), dtype=jnp.float32) * 0.05

    out = cbam_pallas(x, w_fc, b_fc, w_sa, kernel_size=K)
    out = jax.block_until_ready(out)

    ref = cbam_ref(x, w_fc, b_fc, w_sa, kernel_size=K)
    assert out.shape == (B, C, H, W)
    err = jnp.max(jnp.abs(out - ref))
    # 2e-2 covers the single-pass bf16 MXU accumulation of the conv-as-matmul
    # path (Precision.HIGHEST was dropped per the perf review); any
    # structural/indexing bug would be orders of magnitude larger.
    assert jnp.allclose(out, ref, atol=2e-2, rtol=2e-2), f"max abs err {err}"

    print("KERNEL_OK")
</pallas_src>

<mosaic_0001>
module attributes {stable_mosaic.version = 11 : i64} {
  func.func @_cbam_kernel(%arg0: i32, %arg1: memref<2x4x256xf32, #tpu.memory_space<vmem>>, %arg2: memref<4x4xf32, #tpu.memory_space<vmem>>, %arg3: memref<1x4xf32, #tpu.memory_space<vmem>>, %arg4: memref<512x256xf32, #tpu.memory_space<vmem>>, %arg5: memref<2x4x256xf32, #tpu.memory_space<vmem>>) attributes {dimension_semantics = [#tpu.dimension_semantics<parallel>], iteration_bounds = array<i64: 1>, scalar_prefetch = 0 : i64, scratch_operands = 0 : i64, tpu.core_type = #tpu.core_type<tc>, window_params = [{transform_indices = @transform_0, window_bounds = array<i64: 2, 4, 256>}, {pipeline_mode = #tpu.pipeline_mode<synchronous>, transform_indices = @transform_1, window_bounds = array<i64: 4, 4>}, {pipeline_mode = #tpu.pipeline_mode<synchronous>, transform_indices = @transform_2, window_bounds = array<i64: 1, 4>}, {pipeline_mode = #tpu.pipeline_mode<synchronous>, transform_indices = @transform_3, window_bounds = array<i64: 512, 256>}, {transform_indices = @transform_4, window_bounds = array<i64: 2, 4, 256>}]} {
    %c0 = arith.constant 0 : index
    %c0_0 = arith.constant 0 : index
    %c0_1 = arith.constant 0 : index
    %0 = vector.load %arg1[%c0, %c0_0, %c0_1] : memref<2x4x256xf32, #tpu.memory_space<vmem>>, vector<2x4x256xf32>
    %cst = arith.constant dense<0.000000e+00> : vector<2x4xf32>
    %1 = vector.multi_reduction <add>, %0, %cst [2] : vector<2x4x256xf32> to vector<2x4xf32>
    %cst_2 = arith.constant 2.560000e+02 : f32
    %2 = vector.broadcast %cst_2 : f32 to vector<2x4xf32>
    %3 = arith.divf %1, %2 : vector<2x4xf32>
    %4 = vector.shape_cast %3 : vector<2x4xf32> to vector<2x4x1xf32>
    %c0_3 = arith.constant 0 : index
    %c0_4 = arith.constant 0 : index
    %5 = vector.load %arg2[%c0_3, %c0_4] : memref<4x4xf32, #tpu.memory_space<vmem>>, vector<4x4xf32>
    %6 = vector.shape_cast %5 : vector<4x4xf32> to vector<1x4x4xf32>
    %7 = vector.broadcast %4 : vector<2x4x1xf32> to vector<2x4x4xf32>
    %8 = vector.broadcast %6 : vector<1x4x4xf32> to vector<2x4x4xf32>
    %9 = arith.mulf %7, %8 : vector<2x4x4xf32>
    %cst_5 = arith.constant dense<0.000000e+00> : vector<2x4xf32>
    %10 = vector.multi_reduction <add>, %9, %cst_5 [1] : vector<2x4x4xf32> to vector<2x4xf32>
    %c0_6 = arith.constant 0 : index
    %c0_7 = arith.constant 0 : index
    %11 = vector.load %arg3[%c0_6, %c0_7] : memref<1x4xf32, #tpu.memory_space<vmem>>, vector<1x4xf32>
    %12 = vector.broadcast %11 : vector<1x4xf32> to vector<2x4xf32>
    %13 = arith.addf %10, %12 : vector<2x4xf32>
    %cst_8 = arith.constant 0.000000e+00 : f32
    %14 = vector.broadcast %cst_8 : f32 to vector<2x4xf32>
    %15 = arith.subf %14, %13 : vector<2x4xf32>
    %16 = math.exp %15 : vector<2x4xf32>
    %cst_9 = arith.constant 1.000000e+00 : f32
    %17 = vector.broadcast %cst_9 : f32 to vector<2x4xf32>
    %18 = arith.addf %17, %16 : vector<2x4xf32>
    %19 = tpu.reciprocal %18 : vector<2x4xf32> -> vector<2x4xf32>
    %20 = vector.shape_cast %19 : vector<2x4xf32> to vector<2x4x1xf32>
    %21 = vector.broadcast %20 : vector<2x4x1xf32> to vector<2x4x256xf32>
    %22 = arith.mulf %0, %21 : vector<2x4x256xf32>
    %cst_10 = arith.constant dense<0.000000e+00> : vector<2x256xf32>
    %23 = vector.multi_reduction <add>, %22, %cst_10 [1] : vector<2x4x256xf32> to vector<2x256xf32>
    %cst_11 = arith.constant 4.000000e+00 : f32
    %24 = vector.broadcast %cst_11 : f32 to vector<2x256xf32>
    %25 = arith.divf %23, %24 : vector<2x256xf32>
    %cst_12 = arith.constant dense<0xFF800000> : vector<2x256xf32>
    %26 = vector.multi_reduction <maximumf>, %22, %cst_12 [1] : vector<2x4x256xf32> to vector<2x256xf32>
    %27 = tpu.concatenate %25, %26 in 1 : vector<2x256xf32>, vector<2x256xf32> -> vector<2x512xf32>
    %c0_13 = arith.constant 0 : index
    %c0_14 = arith.constant 0 : index
    %28 = vector.load %arg4[%c0_13, %c0_14] : memref<512x256xf32, #tpu.memory_space<vmem>>, vector<512x256xf32>
    %cst_15 = arith.constant dense<0.000000e+00> : vector<2x256xf32>
    %29 = tpu.matmul %27, %28, %cst_15 {dimension_numbers = #tpu.dot_dimension_numbers<[1], [0], [0], [1], [0, 0, 1, 1], [], []>} : vector<2x512xf32>, vector<512x256xf32>, vector<2x256xf32> -> vector<2x256xf32>
    %cst_16 = arith.constant 0.000000e+00 : f32
    %30 = vector.broadcast %cst_16 : f32 to vector<2x256xf32>
    %31 = arith.subf %30, %29 : vector<2x256xf32>
    %32 = math.exp %31 : vector<2x256xf32>
    %cst_17 = arith.constant 1.000000e+00 : f32
    %33 = vector.broadcast %cst_17 : f32 to vector<2x256xf32>
    %34 = arith.addf %33, %32 : vector<2x256xf32>
    %35 = tpu.reciprocal %34 : vector<2x256xf32> -> vector<2x256xf32>
    %36 = vector.shape_cast %35 : vector<2x256xf32> to vector<2x1x256xf32>
    %37 = vector.broadcast %36 : vector<2x1x256xf32> to vector<2x4x256xf32>
    %38 = arith.mulf %22, %37 : vector<2x4x256xf32>
    %c0_18 = arith.constant 0 : index
    %c0_19 = arith.constant 0 : index
    %c0_20 = arith.constant 0 : index
    %39 = vector.load %arg5[%c0_18, %c0_19, %c0_20] : memref<2x4x256xf32, #tpu.memory_space<vmem>>, vector<2x4x256xf32>
    tpu.vector_store %arg5[%c0_18, %c0_19, %c0_20], %38 {strides = array<i32>} : memref<2x4x256xf32, #tpu.memory_space<vmem>>, vector<2x4x256xf32>,
    return
  }
  func.func @transform_0(%arg0: i32) -> (i32, i32, i32) {
    %c0_i32 = arith.constant 0 : i32
    %c0_i32_0 = arith.constant 0 : i32
    %c0_i32_1 = arith.constant 0 : i32
    return %arg0, %c0_i32, %c0_i32_0 : i32, i32, i32
  }
  func.func @transform_1(%arg0: i32) -> (i32, i32) {
    %c0_i32 = arith.constant 0 : i32
    %c0_i32_0 = arith.constant 0 : i32
    %c0_i32_1 = arith.constant 0 : i32
    return %c0_i32, %c0_i32_0 : i32, i32
  }
  func.func @transform_2(%arg0: i32) -> (i32, i32) {
    %c0_i32 = arith.constant 0 : i32
    %c0_i32_0 = arith.constant 0 : i32
    %c0_i32_1 = arith.constant 0 : i32
    return %c0_i32, %c0_i32_0 : i32, i32
  }
  func.func @transform_3(%arg0: i32) -> (i32, i32) {
    %c0_i32 = arith.constant 0 : i32
    %c0_i32_0 = arith.constant 0 : i32
    %c0_i32_1 = arith.constant 0 : i32
    return %c0_i32, %c0_i32_0 : i32, i32
  }
  func.func @transform_4(%arg0: i32) -> (i32, i32, i32) {
    %c0_i32 = arith.constant 0 : i32
    %c0_i32_0 = arith.constant 0 : i32
    %c0_i32_1 = arith.constant 0 : i32
    return %arg0, %c0_i32, %c0_i32_0 : i32, i32, i32
  }
}

</mosaic_0001>

<bundles_post_ra>
// kernel: tpu_custom_call.1
= control target key start
LH: loop header
LB: loop body
LE: loop exit
PB: predicated region body
PF: predicated region fallthrough
CT: control target
= control target key end

     0   :  { %9 = vsyncpa [#allocation3], 0  ;;  %s802_s0 = inlined_call_operand.hbm [shape: f32[2,4,256], index: 0, kind: input, shape index: {}]   ;;  %s803_s1 = inlined_call_operand.hbm [shape: f32[4,4], index: 1, kind: input, shape index: {}]   ;;  %s804_s2 = inlined_call_operand.vmem [shape: f32[1,4], index: 2, kind: input, shape index: {}]   ;;  %s805_s3 = inlined_call_operand.hbm [shape: f32[512,256], index: 3, kind: input, shape index: {}]   ;;  %s806_s4 = inlined_call_operand.hbm [shape: f32[2,4,256], index: 4, kind: output, shape index: {}]  }
   0x1   :  { %10 = vsyncpa [#allocation6], 0 }
   0x2   :  { %11 = vsyncpa [#allocation4], 0  ;;  %s696_s15 = smov [#allocation5]   ;;  %s697_s17 = smov [#allocation2]  }
   0x3   :  { %s30_s16 = sshll.u32 %s696_s15, 4  ;;  %s17_s18 = sshll.u32 %s697_s17, 4  ;;  %s31_s16 = int_to_ptr.vmem [resolvable:$true] %s30_s16  ;;  %s18_s18 = int_to_ptr.vmem [resolvable:$true] %s17_s18 }
   0x4   :  { %s618_s19 = scalar_lea.vmem %s31_s16, 64  ;;  %p623_p1 = scmp.lt.s32.totalorder %s31_s16, %s31_s16 }
   0x5   :  { %p619_p0 = scmp.ne.s32.totalorder %s31_s16, %s618_s19  ;;  %p624_p2 = scmp.lt.s32.totalorder %s618_s19, %s618_s19 }
   0x7   :  { %p625_p3 = por %p624_p2, %p623_p1 }
   0x9   :  { %p626_p4 = pnand %p625_p3, %p619_p0 }
   0xb   :  { %629 = shalt.err (!%p626_p4)
}
   0xc   :  { %33 = dma.hbm_to_vmem [thread:$0]  %s803_s1, 64, %s31_s16, [#allocation6]  }
   0xd   :  { %s638_s22 = scalar_lea.vmem %s18_s18, 256  ;;  %p643_p6 = scmp.lt.s32.totalorder %s18_s18, %s18_s18 }
   0xe   :  { %p639_p5 = scmp.ne.s32.totalorder %s18_s18, %s638_s22  ;;  %p644_p7 = scmp.lt.s32.totalorder %s638_s22, %s638_s22 }
  0x10   :  { %p645_p8 = por %p644_p7, %p643_p6 }
  0x12   :  { %p646_p9 = pnand %p645_p8, %p639_p5 }
  0x14   :  { %649 = shalt.err (!%p646_p9)
}
  0x15   :  { %s698_s23 = smov 128   ;;  %s699_s24 = smov 8  }
  0x16   :  { %23 = dma.hbm_to_vmem [thread:$0]  %s802_s0, 256, %s18_s18, [#allocation3], %s698_s23, %s698_s23, %s699_s24  }
  0x17   :  { %s700_s27 = smov [#allocation7]  }
  0x18   :  { %s41_s28 = sshll.u32 %s700_s27, 4  ;;  %s42_s28 = int_to_ptr.vmem [resolvable:$true] %s41_s28 }
  0x19   :  { %s658_s1 = scalar_lea.vmem %s42_s28, 16384  ;;  %p663_p11 = scmp.lt.s32.totalorder %s42_s28, %s42_s28 }
  0x1a   :  { %p659_p10 = scmp.ne.s32.totalorder %s42_s28, %s658_s1  ;;  %p664_p12 = scmp.lt.s32.totalorder %s658_s1, %s658_s1 }
  0x1c   :  { %p665_p13 = por %p664_p12, %p663_p11 }
  0x1e   :  { %p666_p0 = pnand %p665_p13, %p659_p10 }
  0x20   :  { %669 = shalt.err (!%p666_p0)
}
  0x21   :  { %s701_s29 = smov 256   ;;  %s702_s30 = smov 16  }
  0x22   :  { %47 = dma.hbm_to_vmem [thread:$0]  %s805_s3, 16384, %s42_s28, [#allocation6], %s701_s29, %s701_s29, %s702_s30  }
  0x23   :  { %690 = dma.done.wait [#allocation3], 256  }
  0x24   :  { %691 = vsyncadd [#allocation3], 4294967040 }
  0x25   :  { %692 = dma.done.wait [#allocation6], 16448  }
  0x26   :  { %693 = vsyncadd [#allocation6], 4294950848  ;;  %vm65_vm0 = vcmask 1043456   ;;  %v743_v0 = vld [vmem:[#allocation2] sm:$0xff]  ;;  %v745_v1 = vld [vmem:[#allocation2 + $0x8] sm:$0xff]  ;;  %vm82_vm1 = vcmask 27648  }
  0x27   :  { %v61_v2 = vcombine.high %v743_v0, %v743_v0  ;;  %v66_v3 = vsel %vm65_vm0, %v743_v0, 0.0  ;;  %v62_v4 = vcombine.high %v745_v1, %v745_v1  ;;  %v71_v6 = vsel %vm65_vm0, %v745_v1, 0.0  ;;  %v329_v10 = vld [vmem:[#allocation7 + $0x2f8] sm:$0xff]  ;;  %v328_v11 = vld [vmem:[#allocation7 + $0x2f0] sm:$0xff]  ;;  %v327_v13 = vld [vmem:[#allocation7 + $0x2e8] sm:$0xff] }
  0x28   :  { %v265_v12 = vld [vmem:[#allocation7 + $0xf8] sm:$0xff]  ;;  %433 = vmatprep.subr.mxu1 %v329_v10  ;;  %v264_v14 = vld [vmem:[#allocation7 + $0xf0] sm:$0xff]  ;;  %v326_v15 = vld [vmem:[#allocation7 + $0x2e0] sm:$0xff]  ;;  %vm221_vm2 = vcmask 1041409  }
  0x29   :  { %v67_v5 = vsel %vm65_vm0, %v61_v2, 0.0  ;;  %v72_v7 = vsel %vm65_vm0, %v62_v4, 0.0  ;;  %362 = vmatprep.subr.mxu0 %v265_v12  ;;  %434 = vmatpush1.msra.mxu1 %v328_v11  ;;  %v263_v16 = vld [vmem:[#allocation7 + $0xe8] sm:$0xff]  ;;  %v325_v17 = vld [vmem:[#allocation7 + $0x2d8] sm:$0xff]  ;;  %v262_v18 = vld [vmem:[#allocation7 + $0xe0] sm:$0xff] }
  0x2a   :  { %v68_v8 = vadd.f32 %v67_v5, %v66_v3  ;;  %v73_v9 = vadd.f32 %v72_v7, %v71_v6  ;;  %363 = vmatpush1.msra.mxu0 %v264_v14  ;;  %435 = vmatprep.subr.mxu1 %v327_v13  ;;  %v324_v19 = vld [vmem:[#allocation7 + $0x2d0] sm:$0xff]  ;;  %v261_v20 = vld [vmem:[#allocation7 + $0xd8] sm:$0xff]  ;;  %v323_v21 = vld [vmem:[#allocation7 + $0x2c8] sm:$0xff] }
  0x2b   :  { %364 = vmatprep.subr.mxu0 %v263_v16  ;;  %436 = vmatpush1.msra.mxu1 %v326_v15  ;;  %v260_v22 = vld [vmem:[#allocation7 + $0xd0] sm:$0xff]  ;;  %v259_v23 = vld [vmem:[#allocation7 + $0xc8] sm:$0xff]  ;;  %v322_v24 = vld [vmem:[#allocation7 + $0x2c0] sm:$0xff] }
  0x2c   :  { %69 = vadd.xlane.f32.xlu0 %v68_v8  ;;  %365 = vmatpush1.msra.mxu0 %v262_v18  ;;  %v258_v25 = vld [vmem:[#allocation7 + $0xc0] sm:$0xff]  ;;  %v321_v26 = vld [vmem:[#allocation7 + $0x2b8] sm:$0xff]  ;;  %v320_v28 = vld [vmem:[#allocation7 + $0x2b0] sm:$0xff] }
  0x2d   :  { %437 = vmatprep.subr.mxu1 %v325_v17  ;;  %366 = vmatprep.subr.mxu0 %v261_v20  ;;  %v257_v27 = vld [vmem:[#allocation7 + $0xb8] sm:$0xff]  ;;  %v256_v29 = vld [vmem:[#allocation7 + $0xb0] sm:$0xff]  ;;  %v319_v30 = vld [vmem:[#allocation7 + $0x2a8] sm:$0xff] }
  0x2e   :  { %438 = vmatpush1.msra.mxu1 %v324_v19  ;;  %367 = vmatpush1.msra.mxu0 %v260_v22  ;;  %v255_v31 = vld [vmem:[#allocation7 + $0xa8] sm:$0xff]  ;;  %v318_v32 = vld [vmem:[#allocation7 + $0x2a0] sm:$0xff]  ;;  %v317_v34 = vld [vmem:[#allocation7 + $0x298] sm:$0xff] }
  0x2f   :  { %439 = vmatprep.subr.mxu1 %v323_v21  ;;  %368 = vmatprep.subr.mxu0 %v259_v23  ;;  %v254_v33 = vld [vmem:[#allocation7 + $0xa0] sm:$0xff]  ;;  %v253_v35 = vld [vmem:[#allocation7 + $0x98] sm:$0xff]  ;;  %v316_v36 = vld [vmem:[#allocation7 + $0x290] sm:$0xff] }
  0x30   :  { %74 = vadd.xlane.f32.xlu0 %v73_v9  ;;  %440 = vmatpush1.msra.mxu1 %v322_v24  ;;  %v252_v37 = vld [vmem:[#allocation7 + $0x90] sm:$0xff]  ;;  %v315_v38 = vld [vmem:[#allocation7 + $0x288] sm:$0xff]  ;;  %v314_v40 = vld [vmem:[#allocation7 + $0x280] sm:$0xff] }
  0x31   :  { %369 = vmatpush1.msra.mxu0 %v258_v25  ;;  %441 = vmatprep.subr.mxu1 %v321_v26  ;;  %v251_v39 = vld [vmem:[#allocation7 + $0x88] sm:$0xff]  ;;  %v250_v41 = vld [vmem:[#allocation7 + $0x80] sm:$0xff]  ;;  %v313_v42 = vld [vmem:[#allocation7 + $0x278] sm:$0xff] }
  0x32   :  { %370 = vmatprep.subr.mxu0 %v257_v27  ;;  %442 = vmatpush1.msra.mxu1 %v320_v28  ;;  %v249_v43 = vld [vmem:[#allocation7 + $0x78] sm:$0xff]  ;;  %v312_v44 = vld [vmem:[#allocation7 + $0x270] sm:$0xff]  ;;  %v311_v46 = vld [vmem:[#allocation7 + $0x268] sm:$0xff] }
  0x33   :  { %371 = vmatpush1.msra.mxu0 %v256_v29  ;;  %443 = vmatprep.subr.mxu1 %v319_v30  ;;  %v248_v45 = vld [vmem:[#allocation7 + $0x70] sm:$0xff]  ;;  %v247_v47 = vld [vmem:[#allocation7 + $0x68] sm:$0xff]  ;;  %v310_v48 = vld [vmem:[#allocation7 + $0x260] sm:$0xff] }
  0x34   :  { %372 = vmatprep.subr.mxu0 %v255_v31  ;;  %444 = vmatpush1.msra.mxu1 %v318_v32  ;;  %v246_v49 = vld [vmem:[#allocation7 + $0x60] sm:$0xff]  ;;  %v309_v50 = vld [vmem:[#allocation7 + $0x258] sm:$0xff]  ;;  %v308_v52 = vld [vmem:[#allocation7 + $0x250] sm:$0xff] }
  0x35   :  { %373 = vmatpush1.msra.mxu0 %v254_v33  ;;  %445 = vmatprep.subr.mxu1 %v317_v34  ;;  %v245_v51 = vld [vmem:[#allocation7 + $0x58] sm:$0xff]  ;;  %v244_v53 = vld [vmem:[#allocation7 + $0x50] sm:$0xff]  ;;  %v307_v54 = vld [vmem:[#allocation7 + $0x248] sm:$0xff] }
  0x36   :  { %374 = vmatprep.subr.mxu0 %v253_v35  ;;  %446 = vmatpush1.msra.mxu1 %v316_v36  ;;  %v243_v55 = vld [vmem:[#allocation7 + $0x48] sm:$0xff]  ;;  %v306_v56 = vld [vmem:[#allocation7 + $0x240] sm:$0xff]  ;;  %v305_v58 = vld [vmem:[#allocation7 + $0x238] sm:$0xff] }
  0x37   :  { %375 = vmatpush1.msra.mxu0 %v252_v37  ;;  %447 = vmatprep.subr.mxu1 %v315_v38  ;;  %v242_v57 = vld [vmem:[#allocation7 + $0x40] sm:$0xff]  ;;  %v241_v59 = vld [vmem:[#allocation7 + $0x38] sm:$0xff]  ;;  %v304_v60 = vld [vmem:[#allocation7 + $0x230] sm:$0xff] }
  0x38   :  { %376 = vmatprep.subr.mxu0 %v251_v39  ;;  %448 = vmatpush1.msra.mxu1 %v314_v40  ;;  %v240_v61 = vld [vmem:[#allocation7 + $0x30] sm:$0xff]  ;;  %v303_v62 = vld [vmem:[#allocation7 + $0x228] sm:$0xff]  ;;  %v302_v2 = vld [vmem:[#allocation7 + $0x220] sm:$0xff] }
  0x39   :  { %377 = vmatpush1.msra.mxu0 %v250_v41  ;;  %449 = vmatprep.subr.mxu1 %v313_v42  ;;  %v239_v63 = vld [vmem:[#allocation7 + $0x28] sm:$0xff]  ;;  %v238_v3 = vld [vmem:[#allocation7 + $0x20] sm:$0xff]  ;;  %v301_v4 = vld [vmem:[#allocation7 + $0x218] sm:$0xff] }
  0x3a   :  { %378 = vmatprep.subr.mxu0 %v249_v43  ;;  %450 = vmatpush1.msra.mxu1 %v312_v44  ;;  %v237_v5 = vld [vmem:[#allocation7 + $0x18] sm:$0xff]  ;;  %v300_v6 = vld [vmem:[#allocation7 + $0x210] sm:$0xff]  ;;  %v299_v8 = vld [vmem:[#allocation7 + $0x208] sm:$0xff] }
  0x3b   :  { %379 = vmatpush1.msra.mxu0 %v248_v45  ;;  %451 = vmatprep.subr.mxu1 %v311_v46  ;;  %v236_v7 = vld [vmem:[#allocation7 + $0x10] sm:$0xff]  ;;  %v235_v9 = vld [vmem:[#allocation7 + $0x8] sm:$0xff]  ;;  %v298_v10 = vld [vmem:[#allocation7 + $0x200] sm:$0xff] }
  0x3c   :  { %380 = vmatprep.subr.mxu0 %v247_v47  ;;  %452 = vmatpush1.msra.mxu1 %v310_v48  ;;  %v234_v11 = vld [vmem:[#allocation7] sm:$0xff]  ;;  %v361_v12 = vld [vmem:[#allocation7 + $0x3f8] sm:$0xff]  ;;  %v360_v14 = vld [vmem:[#allocation7 + $0x3f0] sm:$0xff] }
  0x3d   :  { %381 = vmatpush1.msra.mxu0 %v246_v49  ;;  %453 = vmatprep.subr.mxu1 %v309_v50  ;;  %v297_v13 = vld [vmem:[#allocation7 + $0x1f8] sm:$0xff]  ;;  %v296_v15 = vld [vmem:[#allocation7 + $0x1f0] sm:$0xff]  ;;  %v359_v16 = vld [vmem:[#allocation7 + $0x3e8] sm:$0xff] }
  0x3e   :  { %382 = vmatprep.subr.mxu0 %v245_v51  ;;  %454 = vmatpush1.msra.mxu1 %v308_v52  ;;  %v295_v17 = vld [vmem:[#allocation7 + $0x1e8] sm:$0xff]  ;;  %v358_v18 = vld [vmem:[#allocation7 + $0x3e0] sm:$0xff]  ;;  %v357_v20 = vld [vmem:[#allocation7 + $0x3d8] sm:$0xff] }
  0x3f   :  { %383 = vmatpush1.msra.mxu0 %v244_v53  ;;  %455 = vmatprep.subr.mxu1 %v307_v54  ;;  %v294_v19 = vld [vmem:[#allocation7 + $0x1e0] sm:$0xff]  ;;  %v293_v21 = vld [vmem:[#allocation7 + $0x1d8] sm:$0xff]  ;;  %v356_v22 = vld [vmem:[#allocation7 + $0x3d0] sm:$0xff] }
  0x40   :  { %384 = vmatprep.subr.mxu0 %v243_v55  ;;  %456 = vmatpush1.msra.mxu1 %v306_v56  ;;  %v355_v23 = vld [vmem:[#allocation7 + $0x3c8] sm:$0xff]  ;;  %v79_v24 = vld [vmem:[#allocation5] sm:$0xf]  ;;  %v116_v56 = vlaneseq }
  0x41   :  { %385 = vmatpush1.msra.mxu0 %v242_v57  ;;  %457 = vmatprep.subr.mxu1 %v305_v58  ;;  %v581_v41 = vld [vmem:[%s804_s2] ss:$0 sm:$0xff]  ;;  %v292_v57 = vld [vmem:[#allocation7 + $0x1d0] sm:$0xff]  ;;  %v354_v58 = vld [vmem:[#allocation7 + $0x3c0] sm:$0xff]  ;;  %s705_s2 = smov [#allocation8]  }
  0x42   :  { %386 = vmatprep.subr.mxu0 %v241_v59  ;;  %458 = vmatpush1.msra.mxu1 %v304_v60  ;;  %v291_v59 = vld [vmem:[#allocation7 + $0x1c8] sm:$0xff]  ;;  %v353_v60 = vld [vmem:[#allocation7 + $0x3b8] sm:$0xff]  ;;  %s568_s7 = sshll.u32 %s705_s2, 4  ;;  %s569_s7 = int_to_ptr.vmem [resolvable:$true] %s568_s7 }
  0x43   :  { %387 = vmatpush1.msra.mxu0 %v240_v61  ;;  %459 = vmatprep.subr.mxu1 %v303_v62  ;;  %v290_v61 = vld [vmem:[#allocation7 + $0x1c0] sm:$0xff]  ;;  %v352_v62 = vld [vmem:[#allocation7 + $0x3b0] sm:$0xff]  ;;  %s670_s8 = scalar_lea.vmem %s569_s7, 256  ;;  %p675_p2 = scmp.lt.s32.totalorder %s569_s7, %s569_s7 }
  0x44   :  { %388 = vmatprep.subr.mxu0 %v239_v63  ;;  %460 = vmatpush1.msra.mxu1 %v302_v2  ;;  %v289_v63 = vld [vmem:[#allocation7 + $0x1b8] sm:$0xff]  ;;  %v351_v2 = vld [vmem:[#allocation7 + $0x3a8] sm:$0xff]  ;;  %p671_p1 = scmp.ne.s32.totalorder %s569_s7, %s670_s8  ;;  %p676_p3 = scmp.lt.s32.totalorder %s670_s8, %s670_s8 }
  0x45   :  { %389 = vmatpush1.msra.mxu0 %v238_v3  ;;  %461 = vmatprep.subr.mxu1 %v301_v4  ;;  %v760_v3 = vshrl.u32 %v116_v56, 7  ;;  %v288_v4 = vld [vmem:[#allocation7 + $0x1b0] sm:$0xff] }
  0x46   :  { %390 = vmatprep.subr.mxu0 %v237_v5  ;;  %462 = vmatpush1.msra.mxu1 %v300_v6  ;;  %v350_v5 = vld [vmem:[#allocation7 + $0x3a0] sm:$0xff]  ;;  %v287_v6 = vld [vmem:[#allocation7 + $0x1a8] sm:$0xff]  ;;  %p677_p4 = por %p676_p3, %p675_p2 }
  0x47   :  { %391 = vmatpush1.msra.mxu0 %v236_v7  ;;  %463 = vmatprep.subr.mxu1 %v299_v8  ;;  %v349_v7 = vld [vmem:[#allocation7 + $0x398] sm:$0xff]  ;;  %v286_v8 = vld [vmem:[#allocation7 + $0x1a0] sm:$0xff] }
  0x48   :  { %392 = vmatprep.subr.mxu0 %v235_v9  ;;  %464 = vmatpush1.msra.mxu1 %v298_v10  ;;  %v348_v9 = vld [vmem:[#allocation7 + $0x390] sm:$0xff]  ;;  %v285_v10 = vld [vmem:[#allocation7 + $0x198] sm:$0xff]  ;;  %p678_p5 = pnand %p677_p4, %p671_p1 }
  0x49   :  { %393 = vmatpush1.msra.mxu0 %v234_v11  ;;  %465 = vmatprep.subr.mxu1 %v361_v12  ;;  %v347_v11 = vld [vmem:[#allocation7 + $0x388] sm:$0xff]  ;;  %v763_v12 = vsub.s32 0, %v760_v3 }
  0x4a   :  { %394 = vmatprep.subr.mxu0 %v297_v13  ;;  %466 = vmatpush2.msra.mxu1 %v360_v14  ;;  %v284_v13 = vld [vmem:[#allocation7 + $0x190] sm:$0xff]  ;;  %v346_v14 = vld [vmem:[#allocation7 + $0x380] sm:$0xff] }
  0x4b   :  { %395 = vmatpush2.msra.mxu0 %v296_v15  ;;  %467 = vmatprep.subr.mxu1 %v359_v16  ;;  %v283_v15 = vld [vmem:[#allocation7 + $0x188] sm:$0xff]  ;;  %v345_v16 = vld [vmem:[#allocation7 + $0x378] sm:$0xff] }
  0x4c   :  { %396 = vmatprep.subr.mxu0 %v295_v17  ;;  %468 = vmatpush2.msra.mxu1 %v358_v18  ;;  %v282_v17 = vld [vmem:[#allocation7 + $0x180] sm:$0xff]  ;;  %v344_v18 = vld [vmem:[#allocation7 + $0x370] sm:$0xff] }
  0x4d   :  { %397 = vmatpush2.msra.mxu0 %v294_v19  ;;  %469 = vmatprep.subr.mxu1 %v357_v20  ;;  %v281_v19 = vld [vmem:[#allocation7 + $0x178] sm:$0xff] }
  0x4e   :  { %398 = vmatprep.subr.mxu0 %v293_v21  ;;  %470 = vmatpush2.msra.mxu1 %v356_v22  ;;  %v343_v21 = vld [vmem:[#allocation7 + $0x368] sm:$0xff]  ;;  %v280_v22 = vld [vmem:[#allocation7 + $0x170] sm:$0xff] }
  0x4f   :  { %471 = vmatprep.subr.mxu1 %v355_v23  ;;  %399 = vmatpush2.msra.mxu0 %v292_v57  ;;  %v342_v23 = vld [vmem:[#allocation7 + $0x360] sm:$0xff] }
  0x50   :  { %472 = vmatpush2.msra.mxu1 %v354_v58  ;;  %400 = vmatprep.subr.mxu0 %v291_v59 }
  0x51   :  { %473 = vmatprep.subr.mxu1 %v353_v60  ;;  %401 = vmatpush2.msra.mxu0 %v290_v61 }
  0x52   :  { %474 = vmatpush2.msra.mxu1 %v352_v62  ;;  %402 = vmatprep.subr.mxu0 %v289_v63 }
  0x53   :  { %475 = vmatprep.subr.mxu1 %v351_v2  ;;  %403 = vmatpush2.msra.mxu0 %v288_v4 }
  0x54   :  { %476 = vmatpush2.msra.mxu1 %v350_v5  ;;  %404 = vmatprep.subr.mxu0 %v287_v6 }
  0x55   :  { %477 = vmatprep.subr.mxu1 %v349_v7  ;;  %405 = vmatpush2.msra.mxu0 %v286_v8 }
  0x56   :  { %478 = vmatpush2.msra.mxu1 %v348_v9  ;;  %406 = vmatprep.subr.mxu0 %v285_v10 }
  0x57   :  { %479 = vmatprep.subr.mxu1 %v347_v11  ;;  %407 = vmatpush2.msra.mxu0 %v284_v13 }
  0x58   :  { %480 = vmatpush2.msra.mxu1 %v346_v14  ;;  %408 = vmatprep.subr.mxu0 %v283_v15 }
  0x59   :  { %481 = vmatprep.subr.mxu1 %v345_v16  ;;  %409 = vmatpush2.msra.mxu0 %v282_v17 }
  0x5a   :  { %482 = vmatpush2.msra.mxu1 %v344_v18  ;;  %410 = vmatprep.subr.mxu0 %v281_v19 }
  0x5b   :  { %483 = vmatprep.subr.mxu1 %v343_v21  ;;  %411 = vmatpush2.msra.mxu0 %v280_v22 }
  0x5c   :  { %484 = vmatpush2.msra.mxu1 %v342_v23 }
  0xb5   :  { %v70_v25 = vpop.xlane.xlu0 %69 }
  0xb6   :  { %v77_v26 = vmul.f32 0.00390625, %v70_v25  ;;  %v279_v25 = vld [vmem:[#allocation7 + $0x168] sm:$0xff] }
  0xb7   :  { %412 = vmatprep.subr.mxu0 %v279_v25 }
  0xb8   :  { %v80_v27 = vmul.f32 %v79_v24, %v77_v26  ;;  %v341_v26 = vld [vmem:[#allocation7 + $0x358] sm:$0xff] }
  0xb9   :  { %v75_v28 = vpop.xlane.xlu0 %74  ;;  %485 = vmatprep.subr.mxu1 %v341_v26 }
  0xba   :  { %v83_v29 = vsel %vm82_vm1, %v80_v27, 0.0  ;;  %v78_v30 = vmul.f32 0.00390625, %v75_v28  ;;  %v278_v27 = vld [vmem:[#allocation7 + $0x160] sm:$0xff]  ;;  %v340_v28 = vld [vmem:[#allocation7 + $0x350] sm:$0xff] }
  0xbb   :  { %v84_v31 = vrot.slane %v83_v29, 4  ;;  %413 = vmatpush2.msra.mxu0 %v278_v27  ;;  %486 = vmatpush2.msra.mxu1 %v340_v28 }
  0xbc   :  { %v81_v32 = vmul.f32 %v79_v24, %v78_v30  ;;  %v339_v30 = vld [vmem:[#allocation7 + $0x348] sm:$0xff] }
  0xbd   :  { %v85_v33 = vadd.f32 %v84_v31, %v83_v29  ;;  %v277_v29 = vld [vmem:[#allocation7 + $0x158] sm:$0xff]  ;;  %v276_v31 = vld [vmem:[#allocation7 + $0x150] sm:$0xff]  ;;  %487 = vmatprep.subr.mxu1 %v339_v30 }
  0xbe   :  { %v90_v34 = vsel %vm82_vm1, %v81_v32, 0.0  ;;  %414 = vmatprep.subr.mxu0 %v277_v29 }
  0xbf   :  { %v86_v35 = vrot.slane %v85_v33, 2  ;;  %v91_v36 = vrot.slane %v90_v34, 4  ;;  %415 = vmatpush2.msra.mxu0 %v276_v31 }
  0xc1   :  { %v87_v37 = vadd.f32 %v86_v35, %v85_v33  ;;  %v92_v38 = vadd.f32 %v91_v36, %v90_v34  ;;  %v338_v33 = vld [vmem:[#allocation7 + $0x340] sm:$0xff]  ;;  %v275_v35 = vld [vmem:[#allocation7 + $0x148] sm:$0xff]  ;;  %v337_v36 = vld [vmem:[#allocation7 + $0x338] sm:$0xff] }
  0xc2   :  { %488 = vmatpush2.msra.mxu1 %v338_v33  ;;  %416 = vmatprep.subr.mxu0 %v275_v35 }
  0xc3   :  { %v88_v39 = vrot.slane %v87_v37, 1  ;;  %v93_v40 = vrot.slane %v92_v38, 2  ;;  %489 = vmatprep.subr.mxu1 %v337_v36 }
  0xc5   :  { %v89_v42 = vadd.f32 %v88_v39, %v87_v37  ;;  %v94_v43 = vadd.f32 %v93_v40, %v92_v38  ;;  %v274_v37 = vld [vmem:[#allocation7 + $0x140] sm:$0xff]  ;;  %v336_v38 = vld [vmem:[#allocation7 + $0x330] sm:$0xff]  ;;  %v273_v39 = vld [vmem:[#allocation7 + $0x138] sm:$0xff] }
  0xc6   :  { %v335_v40 = vld [vmem:[#allocation7 + $0x328] sm:$0xff]  ;;  %417 = vmatpush2.msra.mxu0 %v274_v37  ;;  %490 = vmatpush2.msra.mxu1 %v336_v38 }
  0xc7   :  { %v104_v44 = vadd.f32 %v581_v41, %v89_v42  ;;  %v95_v45 = vrot.slane %v94_v43, 1  ;;  %v334_v42 = vld [vmem:[#allocation7 + $0x320] sm:$0xff]  ;;  %418 = vmatprep.subr.mxu0 %v273_v39  ;;  %491 = vmatprep.subr.mxu1 %v335_v40 }
  0xc8   :  { %492 = vmatpush2.msra.mxu1 %v334_v42 }
  0xc9   :  { %v106_v46 = vsub.f32 0.0, %v104_v44  ;;  %v96_v47 = vadd.f32 %v95_v45, %v94_v43  ;;  %v271_v43 = vld [vmem:[#allocation7 + $0x128] sm:$0xff]  ;;  %v333_v44 = vld [vmem:[#allocation7 + $0x318] sm:$0xff]  ;;  %v270_v45 = vld [vmem:[#allocation7 + $0x120] sm:$0xff] }
  0xca   :  { %493 = vmatprep.subr.mxu1 %v333_v44 }
  0xcb   :  { %v108_v48 = vmul.f32 1.442695, %v106_v46  ;;  %v105_v49 = vadd.f32 %v581_v41, %v96_v47  ;;  %v272_v41 = vld [vmem:[#allocation7 + $0x130] sm:$0xff]  ;;  %v269_v47 = vld [vmem:[#allocation7 + $0x118] sm:$0xff] }
  0xcc   :  { %v332_v46 = vld [vmem:[#allocation7 + $0x310] sm:$0xff]  ;;  %419 = vmatpush2.msra.mxu0 %v272_v41 }
  0xcd   :  { %594 = vpow2.f32 %v108_v48  ;;  %v107_v50 = vsub.f32 0.0, %v105_v49  ;;  %v331_v48 = vld [vmem:[#allocation7 + $0x308] sm:$0xff]  ;;  %420 = vmatprep.subr.mxu0 %v271_v43  ;;  %v268_v49 = vld [vmem:[#allocation7 + $0x110] sm:$0xff]  ;;  %494 = vmatpush2.msra.mxu1 %v332_v46 }
  0xce   :  { %421 = vmatpush2.msra.mxu0 %v270_v45  ;;  %495 = vmatprep.subr.mxu1 %v331_v48 }
  0xcf   :  { %v110_v51 = vmul.f32 1.442695, %v107_v50  ;;  %v330_v50 = vld [vmem:[#allocation7 + $0x300] sm:$0xff]  ;;  %422 = vmatprep.subr.mxu0 %v269_v47 }
  0xd0   :  { %423 = vmatpush2.msra.mxu0 %v268_v49  ;;  %496 = vmatpush2.msra.mxu1 %v330_v50 }
  0xd1   :  { %596 = vpow2.f32 %v110_v51  ;;  %v267_v51 = vld [vmem:[#allocation7 + $0x108] sm:$0xff] }
  0xd2   :  { %424 = vmatprep.subr.mxu0 %v267_v51 }
  0xda   :  { %v595_v52 = vpop.eup %594 }
  0xdb   :  { %v112_v53 = vadd.f32 1.0, %v595_v52  ;;  %v266_v52 = vld [vmem:[#allocation7 + $0x100] sm:$0xff] }
  0xdc   :  { %425 = vmatpush2.msra.mxu0 %v266_v52 }
  0xdd   :  { %598 = vrcp.f32 %v112_v53  ;;  %v703_v53 = vmov 839922192  }
  0xde   :  { %v597_v54 = vpop.eup %596 }
  0xdf   :  { %v113_v55 = vadd.f32 1.0, %v597_v54  ;;  %v133_v54 = vunpack.c.l.s4 %v703_v53 }
  0xe1   :  { %600 = vrcp.f32 %v113_v55  ;;  %v134_v55 = vunpack.c.0.s8 %v133_v54 }
  0xe3   :  { %v137_v56 = vsub.s32 %v134_v55, %v760_v3 }
  0xea   :  { %v599_v20 = vpop.eup %598 }
  0xeb   :  { %v119_v24 = vrot.slane %v599_v20, %v763_v12 }
  0xed   :  { %121 = vbcast.lane.b32.xlu1 %v119_v24, 256 }
  0xee   :  { %v601_v32 = vpop.eup %600 }
  0xef   :  { %v126_v34 = vrot.slane %v601_v32, %v763_v12 }
  0xf1   :  { %128 = vbcast.lane.b32.xlu1 %v126_v34, 256 }
 0x15f   :  { %v122_v57 = vpop.permute.xlu1 %121 }
 0x160   :  { %v138_v58 = vrot.slane %v122_v57, %v137_v56 }
 0x162   :  { %v769_v59 = vmul.f32 %v138_v58, %v743_v0 }
 0x163   :  { %v129_v60 = vpop.permute.xlu1 %128 }
 0x164   :  { %v152_v61 = vcombine.high %v769_v59, %v769_v59  ;;  %v156_v62 = vsel %vm65_vm0, %v769_v59, 0.0  ;;  %v189_v63 = vsel %vm65_vm0, %v769_v59, -inf  ;;  %v145_v2 = vrot.slane %v129_v60, %v137_v56 }
 0x165   :  { %v157_v4 = vrot.slane %v156_v62, 4  ;;  %v190_v5 = vrot.slane %v189_v63, 4 }
 0x166   :  { %v778_v6 = vmul.f32 %v145_v2, %v745_v1  ;;  %v196_v7 = vsel %vm65_vm0, %v152_v61, -inf  ;;  %v163_v0 = vsel %vm65_vm0, %v152_v61, 0.0 }
 0x167   :  { %v197_v8 = vrot.slane %v196_v7, 4  ;;  %v191_v9 = vmax.f32 %v189_v63, %v190_v5  ;;  %v164_v10 = vrot.slane %v163_v0, 4  ;;  %v158_v11 = vadd.f32 %v157_v4, %v156_v62 }
 0x168   :  { %v153_v13 = vcombine.high %v778_v6, %v778_v6  ;;  %v170_v14 = vsel %vm65_vm0, %v778_v6, 0.0  ;;  %v203_v15 = vsel %vm65_vm0, %v778_v6, -inf }
 0x169   :  { %v171_v16 = vrot.slane %v170_v14, 4  ;;  %v204_v1 = vrot.slane %v203_v15, 4  ;;  %v198_v17 = vmax.f32 %v196_v7, %v197_v8  ;;  %v192_v18 = vrot.slane %v191_v9, 2 }
 0x16a   :  { %v210_v19 = vsel %vm65_vm0, %v153_v13, -inf  ;;  %v165_v20 = vadd.f32 %v164_v10, %v163_v0  ;;  %v177_v21 = vsel %vm65_vm0, %v153_v13, 0.0  ;;  %v159_v22 = vrot.slane %v158_v11, 2 }
 0x16b   :  { %v199_v23 = vrot.slane %v198_v17, 2  ;;  %v211_v24 = vrot.slane %v210_v19, 4  ;;  %v205_v25 = vmax.f32 %v203_v15, %v204_v1  ;;  %v178_v27 = vrot.slane %v177_v21, 4 }
 0x16c   :  { %v166_v26 = vrot.slane %v165_v20, 2  ;;  %v172_v28 = vadd.f32 %v171_v16, %v170_v14  ;;  %v160_v32 = vadd.f32 %v159_v22, %v158_v11  ;;  %v193_v33 = vmax.f32 %v191_v9, %v192_v18 }
 0x16d   :  { %v200_v29 = vmax.f32 %v198_v17, %v199_v23  ;;  %v212_v30 = vmax.f32 %v210_v19, %v211_v24  ;;  %v206_v31 = vrot.slane %v205_v25, 2  ;;  %v179_v35 = vadd.f32 %v178_v27, %v177_v21 }
 0x16e   :  { %v167_v34 = vadd.f32 %v166_v26, %v165_v20  ;;  %v173_v36 = vrot.slane %v172_v28, 2  ;;  %v161_v45 = vrot.slane %v160_v32, 1  ;;  %v194_v46 = vrot.slane %v193_v33, 1 }
 0x16f   :  { %v213_v37 = vrot.slane %v212_v30, 2  ;;  %v207_v38 = vmax.f32 %v205_v25, %v206_v31  ;;  %v180_v40 = vrot.slane %v179_v35, 2  ;;  %v201_v42 = vrot.slane %v200_v29, 1 }
 0x170   :  { %v168_v39 = vrot.slane %v167_v34, 1  ;;  %v174_v41 = vadd.f32 %v173_v36, %v172_v28  ;;  %v162_v56 = vadd.f32 %v161_v45, %v160_v32  ;;  %v195_v57 = vmax.f32 %v193_v33, %v194_v46 }
 0x171   :  { %v214_v43 = vmax.f32 %v212_v30, %v213_v37  ;;  %v208_v44 = vrot.slane %v207_v38, 1  ;;  %v181_v47 = vadd.f32 %v180_v40, %v179_v35  ;;  %v202_v54 = vmax.f32 %v200_v29, %v201_v42 }
 0x172   :  { %v175_v48 = vrot.slane %v174_v41, 1  ;;  %v169_v51 = vadd.f32 %v168_v39, %v167_v34  ;;  %v185_v4 = vmul.f32 0.25, %v162_v56  ;;  %v704_v21 = vmov 1966171168  }
 0x173   :  { %v215_v49 = vrot.slane %v214_v43, 1  ;;  %v209_v50 = vmax.f32 %v207_v38, %v208_v44  ;;  %v182_v52 = vrot.slane %v181_v47, 1  ;;  %v518_v22 = vunpack.c.l.s4 %v704_v21 }
 0x174   :  { %v176_v53 = vadd.f32 %v175_v48, %v174_v41  ;;  %v186_v63 = vmul.f32 0.25, %v169_v51  ;;  %v545_v29 = vsub.s32 1, %v760_v3 }
 0x175   :  { %v216_v55 = vmax.f32 %v214_v43, %v215_v49  ;;  %v183_v58 = vadd.f32 %v182_v52, %v181_v47  ;;  %v230_v62 = vsel %vm221_vm2, %v209_v50, %v195_v57  ;;  %v519_v23 = vunpack.c.0.s8 %v518_v22 }
 0x176   :  { %v187_v61 = vmul.f32 0.25, %v176_v53 }
 0x177   :  { %v231_v60 = vsel %vm221_vm2, %v216_v55, %v202_v54  ;;  %v188_v2 = vmul.f32 0.25, %v183_v58  ;;  %v522_v25 = vsub.s32 %v519_v23, %v760_v3 }
 0x178   :  { %497 = vmatprep.mubr.f32.mxu1 %v231_v60  ;;  %v222_v7 = vsel %vm221_vm2, %v187_v61, %v185_v4 }
 0x179   :  { %498 = vmatmul.mubr.f32.vlgmr.msra.gmra.mxu1 %v230_v62  ;;  %v223_v5 = vsel %vm221_vm2, %v188_v2, %v186_v63 }
 0x17a   :  { %426 = vmatprep.mubr.f32.mxu0 %v223_v5 }
 0x17b   :  { %427 = vmatmul.mubr.f32.vlgmr.msra.gmra.mxu0 %v222_v7 }
 0x239   :  { %v499_v0 = vpop.f32.mrf.mxu1 }
 0x23b   :  { %v428_v8 = vpop.f32.mrf.mxu0  ;;  %v501_v10 = vpop.f32.mrf.mxu1 }
 0x23c   :  { %v500_v9 = vadd.f32 %v499_v0, %v428_v8 }
 0x23d   :  { %v430_v11 = vpop.f32.mrf.mxu0 }
 0x23e   :  { %v504_v13 = vsub.f32 0.0, %v500_v9  ;;  %v502_v14 = vadd.f32 %v501_v10, %v430_v11 }
 0x240   :  { %v506_v15 = vmul.f32 1.442695, %v504_v13  ;;  %v505_v16 = vsub.f32 0.0, %v502_v14 }
 0x242   :  { %602 = vpow2.f32 %v506_v15  ;;  %v508_v1 = vmul.f32 1.442695, %v505_v16 }
 0x244   :  { %604 = vpow2.f32 %v508_v1 }
 0x24f   :  { %v603_v17 = vpop.eup %602 }
 0x250   :  { %v510_v18 = vadd.f32 1.0, %v603_v17 }
 0x251   :  { %v605_v19 = vpop.eup %604 }
 0x252   :  { %v511_v20 = vadd.f32 1.0, %v605_v19  ;;  %606 = vrcp.f32 %v510_v18 }
 0x254   :  { %608 = vrcp.f32 %v511_v20 }
 0x25f   :  { %v607_v24 = vpop.eup %606 }
 0x261   :  { %v609_v26 = vpop.eup %608 }
 0x262   :  { %v516_v27 = vcombine.low %v607_v24, %v609_v26 }
 0x264   :  { %v523_v28 = vrot.slane %v516_v27, %v522_v25 }
 0x266   :  { %v524_v30 = vcombine.high %v523_v28, %v523_v28  ;;  %v531_v31 = vrot.slane %v523_v28, %v522_v25 }
 0x268   :  { %v538_v32 = vrot.slane %v524_v30, %v522_v25  ;;  %v542_v33 = vrot.slane %v531_v31, %v763_v12  ;;  %v546_v34 = vrot.slane %v531_v31, %v545_v29 }
 0x26a   :  { %v550_v35 = vrot.slane %v538_v32, %v763_v12  ;;  %v554_v36 = vrot.slane %v538_v32, %v545_v29  ;;  %v555_v37 = vcombine.low %v542_v33, %v546_v34 }
 0x26c   :  { %v556_v38 = vcombine.low %v550_v35, %v554_v36  ;;  %v559_v39 = vmul.f32 %v555_v37, %v769_v59 }
 0x26e   :  { %v560_v40 = vmul.f32 %v556_v38, %v778_v6  ;;  %561 = vst [vmem:[#allocation8] sm:$0xff] %v559_v39 }
 0x270   :  { %562 = vst [vmem:[#allocation8 + $0x8] sm:$0xff] %v560_v40 }
 0x271   :  { %681 = shalt.err (!%p678_p5)
}
 0x272   :  { %574 = dma.vmem_to_hbm [thread:$0]  %s569_s7, 256, %s806_s4, [#allocation4], %s698_s23, %s698_s23, %s699_s24  }
 0x273   :  { %694 = dma.done.wait [#allocation4], 256  }
 0x274   :  { %695 = vsyncadd [#allocation4], 4294967040 }
 0x275   :  { %578 = vsyncpa [#allocation3], 1 }
 0x276   :  { %579 = vsyncpa [#allocation6], 1 }
 0x277   :  { %580 = vsyncpa [#allocation4], 1 }

</bundles_post_ra>
